<compile_context>
chip_gen: v5e
topology: v5e:2x2
jax: 0.10.0
libtpu: 0.0.40
codegen_flags: <defaults>
</compile_context>

<pallas_src>
import functools

import jax
import jax.numpy as jnp
from jax.experimental import pallas as pl
from jax.experimental.pallas import tpu as pltpu


def _round_up(x, m):
    return ((x + m - 1) // m) * m


def _pad2d(x, rows, cols):
    return jnp.pad(x, ((0, rows - x.shape[0]), (0, cols - x.shape[1])))


# --------------------------------------------------------------------------
# Kernel: fused 3-layer MLP on one batch tile.  bf16 operands on the MXU,
# f32 accumulation, bias/ReLU in f32, activations re-cast to bf16 between
# layers.  Output tile is bf16 and lane-dense (last dim multiple of 128).
# --------------------------------------------------------------------------
def sysmodel_kernel(xa_ref, w1_ref, b1_ref, w2_ref, b2_ref, w3_ref, b3_ref,
                    out_ref):
    xa = xa_ref[...]                                              # (tb, S+A) bf16

    # Layer 1 (single dot; concat already folded in the wrapper)
    h1 = jnp.dot(xa, w1_ref[...], preferred_element_type=jnp.float32) + b1_ref[...]
    h1 = jnp.maximum(h1, 0.0).astype(jnp.bfloat16)

    # Layer 2
    h2 = jnp.dot(h1, w2_ref[...], preferred_element_type=jnp.float32) + b2_ref[...]
    h2 = jnp.maximum(h2, 0.0).astype(jnp.bfloat16)

    # Layer 3 (no activation)
    out = jnp.dot(h2, w3_ref[...], preferred_element_type=jnp.float32) + b3_ref[...]
    out_ref[...] = out.astype(out_ref.dtype)


# --------------------------------------------------------------------------
# Parameter handling
# --------------------------------------------------------------------------
def init_params(key, state_size, action_size, fc1_units=400, fc2_units=300):
    """PyTorch-Linear-style init: U(-1/sqrt(fan_in), 1/sqrt(fan_in)).
    Weights stored as (in, out), f32, unpadded (reference parameters)."""
    ks = jax.random.split(key, 6)

    def linear(kw, kb, fan_in, fan_out):
        bound = 1.0 / jnp.sqrt(jnp.float32(fan_in))
        w = jax.random.uniform(kw, (fan_in, fan_out), jnp.float32, -bound, bound)
        b = jax.random.uniform(kb, (1, fan_out), jnp.float32, -bound, bound)
        return w, b

    w1, b1 = linear(ks[0], ks[1], state_size + action_size, fc1_units)
    w2, b2 = linear(ks[2], ks[3], fc1_units, fc2_units)
    w3, b3 = linear(ks[4], ks[5], fc2_units, state_size)
    return (w1, b1, w2, b2, w3, b3)


def prepare_kernel_params(params, weight_dtype=jnp.bfloat16):
    """One-time prep: zero-pad feature dims to lane multiples (derived from the
    actual layer sizes), cast weights to bf16.  Biases stay f32.  Zero padding
    keeps padded lanes at exactly 0 through ReLU and the final layer."""
    w1, b1, w2, b2, w3, b3 = params
    k_in, f1 = w1.shape
    f2 = w2.shape[1]
    s_out = w3.shape[1]
    f1p = _round_up(f1, 128)        # 400 -> 512
    f2p = _round_up(f2, 128)        # 300 -> 384 (do NOT pad to 512)
    outp = _round_up(s_out, 128)    # state_size -> 128 (lane-dense stores)

    w1p = _pad2d(w1, k_in, f1p).astype(weight_dtype)
    b1p = _pad2d(b1, 1, f1p).astype(jnp.float32)
    w2p = _pad2d(w2, f1p, f2p).astype(weight_dtype)
    b2p = _pad2d(b2, 1, f2p).astype(jnp.float32)
    w3p = _pad2d(w3, f2p, outp).astype(weight_dtype)
    b3p = _pad2d(b3, 1, outp).astype(jnp.float32)
    return (w1p, b1p, w2p, b2p, w3p, b3p)


# --------------------------------------------------------------------------
# Forward wrapper
# --------------------------------------------------------------------------
@functools.partial(jax.jit, static_argnames=("batch_tile",))
def sysmodel_forward(state, action, kparams, *, batch_tile=512):
    w1, b1, w2, b2, w3, b3 = kparams
    B, S = state.shape
    K = w1.shape[0]            # S + A
    out_pad = w3.shape[1]

    # Fold the concat into the wrapper (one tiny XLA op) and cast inputs to
    # bf16 once, so layer 1 is a single MXU dot and input DMA is halved.
    xa = jnp.concatenate([state, action], axis=1).astype(jnp.bfloat16)

    if B < 16:
        # Tiny batch: one grid step, block == full array (no alignment needed).
        num_tiles, tb, b_pad = 1, B, B
    else:
        # >= 2 tiles so both v7x TensorCores get work; per-tile rows rounded to
        # 16 (bf16 sublane packing) so batch padding waste is at most 31 rows.
        num_tiles = max(2, pl.cdiv(B, batch_tile))
        tb = _round_up(pl.cdiv(B, num_tiles), 16)
        b_pad = num_tiles * tb
        if b_pad != B:
            xa = jnp.pad(xa, ((0, b_pad - B), (0, 0)))

    const = lambda i: (0, 0)   # weights/biases: VMEM-resident across grid steps

    out = pl.pallas_call(
        sysmodel_kernel,
        out_shape=jax.ShapeDtypeStruct((b_pad, out_pad), jnp.bfloat16),
        grid_spec=pltpu.PrefetchScalarGridSpec(
            num_scalar_prefetch=0,
            grid=(num_tiles,),
            in_specs=[
                pl.BlockSpec((tb, K), lambda i: (i, 0)),   # xa tile
                pl.BlockSpec(w1.shape, const),
                pl.BlockSpec(b1.shape, const),
                pl.BlockSpec(w2.shape, const),
                pl.BlockSpec(b2.shape, const),
                pl.BlockSpec(w3.shape, const),
                pl.BlockSpec(b3.shape, const),
            ],
            out_specs=pl.BlockSpec((tb, out_pad), lambda i: (i, 0)),
        ),
        compiler_params=pltpu.CompilerParams(
            dimension_semantics=("parallel",)),   # megacore-shardable on v7x
    )(xa, w1, b1, w2, b2, w3, b3)

    # Slice off batch padding and output lane padding; return f32 like PyTorch.
    return out[:B, :S].astype(jnp.float32)


# --------------------------------------------------------------------------
# References (for correctness checks)
# --------------------------------------------------------------------------
def reference_bf16(state, action, kparams, state_size):
    """Same quantized math as the kernel (bf16 operands, f32 accumulate,
    bf16 final cast)."""
    w1, b1, w2, b2, w3, b3 = kparams
    xa = jnp.concatenate([state, action], axis=1).astype(jnp.bfloat16)
    h1 = jnp.dot(xa, w1, preferred_element_type=jnp.float32) + b1
    h1 = jnp.maximum(h1, 0.0).astype(jnp.bfloat16)
    h2 = jnp.dot(h1, w2, preferred_element_type=jnp.float32) + b2
    h2 = jnp.maximum(h2, 0.0).astype(jnp.bfloat16)
    out = (jnp.dot(h2, w3, preferred_element_type=jnp.float32) + b3).astype(jnp.bfloat16)
    return out[:, :state_size].astype(jnp.float32)


def reference_f32(state, action, params):
    """Exact f32 PyTorch-equivalent math (unpadded weights)."""
    w1, b1, w2, b2, w3, b3 = params
    xa = jnp.concatenate([state, action], axis=1)
    h = jnp.maximum(xa @ w1 + b1, 0.0)
    h = jnp.maximum(h @ w2 + b2, 0.0)
    return h @ w3 + b3


if __name__ == "__main__":
    key = jax.random.PRNGKey(0)
    k_state, k_action, k_params, k_state2, k_action2 = jax.random.split(key, 5)

    state_size = 8
    action_size = 4

    params = init_params(k_params, state_size, action_size)
    kparams = prepare_kernel_params(params)

    def check(batch, ks, ka):
        state = jax.random.normal(ks, (batch, state_size), jnp.float32)
        action = jax.random.normal(ka, (batch, action_size), jnp.float32)

        out = sysmodel_forward(state, action, kparams)
        out = jax.block_until_ready(out)
        assert out.shape == (batch, state_size)

        # Same-quantization reference (bf16 weights/activations, f32 accumulate).
        ref_q = reference_bf16(state, action, kparams, state_size)
        assert jnp.allclose(out, ref_q, atol=2e-2, rtol=2e-2), (
            f"B={batch}: max abs diff vs bf16 ref: {jnp.max(jnp.abs(out - ref_q))}")

        # Loose check against full-precision PyTorch-equivalent math
        # (bf16 weights/output introduce ~1e-2-level relative error).
        ref_f = reference_f32(state, action, params)
        assert jnp.allclose(out, ref_f, atol=1e-1, rtol=1e-1), (
            f"B={batch}: max abs diff vs f32 ref: {jnp.max(jnp.abs(out - ref_f))}")

    # Tiny batch (single-tile path) and a moderate batch (multi-tile / 2-TC path).
    check(2, k_state, k_action)
    check(40, k_state2, k_action2)

    print("KERNEL_OK")
</pallas_src>

<mosaic_0001>
module attributes {stable_mosaic.version = 11 : i64} {
  func.func @sysmodel_kernel(%arg0: i32, %arg1: memref<2x12xbf16, #tpu.memory_space<vmem>>, %arg2: memref<12x512xbf16, #tpu.memory_space<vmem>>, %arg3: memref<1x512xf32, #tpu.memory_space<vmem>>, %arg4: memref<512x384xbf16, #tpu.memory_space<vmem>>, %arg5: memref<1x384xf32, #tpu.memory_space<vmem>>, %arg6: memref<384x128xbf16, #tpu.memory_space<vmem>>, %arg7: memref<1x128xf32, #tpu.memory_space<vmem>>, %arg8: memref<2x128xbf16, #tpu.memory_space<vmem>>) attributes {dimension_semantics = [#tpu.dimension_semantics<parallel>], iteration_bounds = array<i64: 1>, scalar_prefetch = 0 : i64, scratch_operands = 0 : i64, tpu.core_type = #tpu.core_type<tc>, window_params = [{transform_indices = @transform_0, window_bounds = array<i64: 2, 12>}, {pipeline_mode = #tpu.pipeline_mode<synchronous>, transform_indices = @transform_1, window_bounds = array<i64: 12, 512>}, {pipeline_mode = #tpu.pipeline_mode<synchronous>, transform_indices = @transform_2, window_bounds = array<i64: 1, 512>}, {pipeline_mode = #tpu.pipeline_mode<synchronous>, transform_indices = @transform_3, window_bounds = array<i64: 512, 384>}, {pipeline_mode = #tpu.pipeline_mode<synchronous>, transform_indices = @transform_4, window_bounds = array<i64: 1, 384>}, {pipeline_mode = #tpu.pipeline_mode<synchronous>, transform_indices = @transform_5, window_bounds = array<i64: 384, 128>}, {pipeline_mode = #tpu.pipeline_mode<synchronous>, transform_indices = @transform_6, window_bounds = array<i64: 1, 128>}, {transform_indices = @transform_7, window_bounds = array<i64: 2, 128>}]} {
    %c0 = arith.constant 0 : index
    %c0_0 = arith.constant 0 : index
    %0 = vector.load %arg1[%c0, %c0_0] : memref<2x12xbf16, #tpu.memory_space<vmem>>, vector<2x12xbf16>
    %c0_1 = arith.constant 0 : index
    %c0_2 = arith.constant 0 : index
    %1 = vector.load %arg2[%c0_1, %c0_2] : memref<12x512xbf16, #tpu.memory_space<vmem>>, vector<12x512xbf16>
    %cst = arith.constant dense<0.000000e+00> : vector<2x512xf32>
    %2 = tpu.matmul %0, %1, %cst {dimension_numbers = #tpu.dot_dimension_numbers<[1], [0], [0], [1], [0, 0, 1, 1], [], []>} : vector<2x12xbf16>, vector<12x512xbf16>, vector<2x512xf32> -> vector<2x512xf32>
    %c0_3 = arith.constant 0 : index
    %c0_4 = arith.constant 0 : index
    %3 = vector.load %arg3[%c0_3, %c0_4] : memref<1x512xf32, #tpu.memory_space<vmem>>, vector<1x512xf32>
    %4 = vector.broadcast %3 : vector<1x512xf32> to vector<2x512xf32>
    %5 = arith.addf %2, %4 : vector<2x512xf32>
    %cst_5 = arith.constant 0.000000e+00 : f32
    %6 = vector.broadcast %cst_5 : f32 to vector<2x512xf32>
    %7 = arith.maximumf %5, %6 : vector<2x512xf32>
    %8 = arith.truncf %7 : vector<2x512xf32> to vector<2x512xbf16>
    %c0_6 = arith.constant 0 : index
    %c0_7 = arith.constant 0 : index
    %9 = vector.load %arg4[%c0_6, %c0_7] : memref<512x384xbf16, #tpu.memory_space<vmem>>, vector<512x384xbf16>
    %cst_8 = arith.constant dense<0.000000e+00> : vector<2x384xf32>
    %10 = tpu.matmul %8, %9, %cst_8 {dimension_numbers = #tpu.dot_dimension_numbers<[1], [0], [0], [1], [0, 0, 1, 1], [], []>} : vector<2x512xbf16>, vector<512x384xbf16>, vector<2x384xf32> -> vector<2x384xf32>
    %c0_9 = arith.constant 0 : index
    %c0_10 = arith.constant 0 : index
    %11 = vector.load %arg5[%c0_9, %c0_10] : memref<1x384xf32, #tpu.memory_space<vmem>>, vector<1x384xf32>
    %12 = vector.broadcast %11 : vector<1x384xf32> to vector<2x384xf32>
    %13 = arith.addf %10, %12 : vector<2x384xf32>
    %cst_11 = arith.constant 0.000000e+00 : f32
    %14 = vector.broadcast %cst_11 : f32 to vector<2x384xf32>
    %15 = arith.maximumf %13, %14 : vector<2x384xf32>
    %16 = arith.truncf %15 : vector<2x384xf32> to vector<2x384xbf16>
    %c0_12 = arith.constant 0 : index
    %c0_13 = arith.constant 0 : index
    %17 = vector.load %arg6[%c0_12, %c0_13] : memref<384x128xbf16, #tpu.memory_space<vmem>>, vector<384x128xbf16>
    %cst_14 = arith.constant dense<0.000000e+00> : vector<2x128xf32>
    %18 = tpu.matmul %16, %17, %cst_14 {dimension_numbers = #tpu.dot_dimension_numbers<[1], [0], [0], [1], [0, 0, 1, 1], [], []>} : vector<2x384xbf16>, vector<384x128xbf16>, vector<2x128xf32> -> vector<2x128xf32>
    %c0_15 = arith.constant 0 : index
    %c0_16 = arith.constant 0 : index
    %19 = vector.load %arg7[%c0_15, %c0_16] : memref<1x128xf32, #tpu.memory_space<vmem>>, vector<1x128xf32>
    %20 = vector.broadcast %19 : vector<1x128xf32> to vector<2x128xf32>
    %21 = arith.addf %18, %20 : vector<2x128xf32>
    %22 = arith.truncf %21 : vector<2x128xf32> to vector<2x128xbf16>
    %c0_17 = arith.constant 0 : index
    %c0_18 = arith.constant 0 : index
    %23 = vector.load %arg8[%c0_17, %c0_18] : memref<2x128xbf16, #tpu.memory_space<vmem>>, vector<2x128xbf16>
    tpu.vector_store %arg8[%c0_17, %c0_18], %22 {strides = array<i32>} : memref<2x128xbf16, #tpu.memory_space<vmem>>, vector<2x128xbf16>,
    return
  }
  func.func @transform_0(%arg0: i32) -> (i32, i32) {
    %c0_i32 = arith.constant 0 : i32
    %c0_i32_0 = arith.constant 0 : i32
    return %arg0, %c0_i32 : i32, i32
  }
  func.func @transform_1(%arg0: i32) -> (i32, i32) {
    %c0_i32 = arith.constant 0 : i32
    %c0_i32_0 = arith.constant 0 : i32
    %c0_i32_1 = arith.constant 0 : i32
    return %c0_i32, %c0_i32_0 : i32, i32
  }
  func.func @transform_2(%arg0: i32) -> (i32, i32) {
    %c0_i32 = arith.constant 0 : i32
    %c0_i32_0 = arith.constant 0 : i32
    %c0_i32_1 = arith.constant 0 : i32
    return %c0_i32, %c0_i32_0 : i32, i32
  }
  func.func @transform_3(%arg0: i32) -> (i32, i32) {
    %c0_i32 = arith.constant 0 : i32
    %c0_i32_0 = arith.constant 0 : i32
    %c0_i32_1 = arith.constant 0 : i32
    return %c0_i32, %c0_i32_0 : i32, i32
  }
  func.func @transform_4(%arg0: i32) -> (i32, i32) {
    %c0_i32 = arith.constant 0 : i32
    %c0_i32_0 = arith.constant 0 : i32
    %c0_i32_1 = arith.constant 0 : i32
    return %c0_i32, %c0_i32_0 : i32, i32
  }
  func.func @transform_5(%arg0: i32) -> (i32, i32) {
    %c0_i32 = arith.constant 0 : i32
    %c0_i32_0 = arith.constant 0 : i32
    %c0_i32_1 = arith.constant 0 : i32
    return %c0_i32, %c0_i32_0 : i32, i32
  }
  func.func @transform_6(%arg0: i32) -> (i32, i32) {
    %c0_i32 = arith.constant 0 : i32
    %c0_i32_0 = arith.constant 0 : i32
    %c0_i32_1 = arith.constant 0 : i32
    return %c0_i32, %c0_i32_0 : i32, i32
  }
  func.func @transform_7(%arg0: i32) -> (i32, i32) {
    %c0_i32 = arith.constant 0 : i32
    %c0_i32_0 = arith.constant 0 : i32
    return %arg0, %c0_i32 : i32, i32
  }
}

</mosaic_0001>

<bundles_post_ra>
// kernel: sysmodel_forward.1
= control target key start
LH: loop header
LB: loop body
LE: loop exit
PB: predicated region body
PF: predicated region fallthrough
CT: control target
= control target key end

     0   :  { %12 = vsyncpa [#allocation3], 0  ;;  %s2058_s0 = inlined_call_operand.vmem [shape: bf16[2,12], index: 0, kind: input, shape index: {}]   ;;  %s2059_s1 = inlined_call_operand.hbm [shape: bf16[12,512], index: 1, kind: input, shape index: {}]   ;;  %s2060_s2 = inlined_call_operand.vmem [shape: f32[1,512], index: 2, kind: input, shape index: {}]   ;;  %s2061_s3 = inlined_call_operand.hbm [shape: bf16[512,384], index: 3, kind: input, shape index: {}]   ;;  %s2062_s4 = inlined_call_operand.vmem [shape: f32[1,384], index: 4, kind: input, shape index: {}]   ;;  %s2063_s5 = inlined_call_operand.hbm [shape: bf16[384,128], index: 5, kind: input, shape index: {}]   ;;  %s2064_s6 = inlined_call_operand.vmem [shape: f32[1,128], index: 6, kind: input, shape index: {}]   ;;  %s2065_s7 = inlined_call_operand.vmem [shape: bf16[2,128], index: 7, kind: output, shape index: {}]  }
   0x1   :  { %13 = vsyncpa [#allocation5], 0  ;;  %s35_s26 = sshll.u32 %s2061_s3, 4  ;;  %s1945_s27 = smov [#allocation4]   ;;  %s36_s26 = int_to_ptr.hbm [resolvable:$true] %s35_s26 }
   0x2   :  { %s37_s28 = sshll.u32 %s1945_s27, 4  ;;  %s20_s8 = sshll.u32 %s2059_s1, 4  ;;  %s38_s28 = int_to_ptr.vmem [resolvable:$true] %s37_s28  ;;  %s21_s8 = int_to_ptr.hbm [resolvable:$true] %s20_s8 }
   0x3   :  { %s1946_s9 = smov 192   ;;  %s1947_s10 = smov 12  }
   0x4   :  { %43 = dma.hbm_to_vmem [thread:$0]  %s36_s26, 12288, %s38_s28, [#allocation5], %s1946_s9, %s1946_s9, %s1947_s10  }
   0x5   :  { %s1948_s11 = smov [#allocation2]   ;;  %s1949_s13 = smov 256  }
   0x6   :  { %s22_s12 = sshll.u32 %s1948_s11, 4  ;;  %s1950_s14 = smov 16   ;;  %s23_s12 = int_to_ptr.vmem [resolvable:$true] %s22_s12 }
   0x7   :  { %28 = dma.hbm_to_vmem [thread:$0]  %s21_s8, 512, %s23_s12, [#allocation3], %s1949_s13, %s1949_s13, %s1950_s14  }
   0x8   :  { %s50_s16 = sshll.u32 %s2063_s5, 4  ;;  %s1951_s17 = smov [#allocation6]   ;;  %s51_s16 = int_to_ptr.hbm [resolvable:$true] %s50_s16 }
   0x9   :  { %s52_s18 = sshll.u32 %s1951_s17, 4  ;;  %s1952_s19 = smov 64   ;;  %s53_s18 = int_to_ptr.vmem [resolvable:$true] %s52_s18 }
   0xa   :  { %s1953_s1 = smov 4  }
   0xb   :  { %58 = dma.hbm_to_vmem [thread:$0]  %s51_s16, 3072, %s53_s18, [#allocation5], %s1952_s19, %s1952_s19, %s1953_s1  }
   0xc   :  { %1941 = dma.done.wait [#allocation3], 512  }
   0xd   :  { %1942 = vsyncadd [#allocation3], 4294966784 }
   0xe   :  { %1943 = dma.done.wait [#allocation5], 15360  }
   0xf   :  { %1944 = vsyncadd [#allocation5], 4294951936  ;;  %vm109_vm0 = vcmask 1045504   ;;  %v1237_v0 = vld [vmem:[#allocation2] sm:$0xf]  ;;  %vm105_vm1 = vcmask 97280  }
  0x10   :  { %v1737_v1 = vld [vmem:[#allocation2 + $0xc] sm:$0x30]  ;;  %v1735_v2 = vld [vmem:[#allocation2 + $0x4] sm:$0xf]  ;;  %v1239_v4 = vld [vmem:[#allocation2 + $0x10] sm:$0x30] }
  0x11   :  { %v1238_v3 = vor.u32 %v1737_v1, %v1237_v0  ;;  %v1245_v5 = vld [vmem:[#allocation2 + $0x8] sm:$0xf]  ;;  %v1738_v6 = vld [vmem:[#allocation2 + $0x14] sm:$0x30]  ;;  %v1242_v7 = vor.u32 %v1735_v2, %v1239_v4  ;;  %v2006_v9 = vld [vmem:[%s2058_s0] sm:$0x1] }
  0x12   :  { %v1246_v8 = vor.u32 %v1738_v6, %v1245_v5  ;;  %v1736_v10 = vld [vmem:[#allocation2 + $0xc] sm:$0xf]  ;;  %v1247_v11 = vld [vmem:[#allocation2 + $0x18] sm:$0x30]  ;;  %v1437_v14 = vld [vmem:[#allocation4 + $0x168] sm:$0xf] }
  0x13   :  { %v111_v12 = vsel %vm109_vm0, %v1238_v3, 0  ;;  %v1250_v13 = vor.u32 %v1736_v10, %v1247_v11  ;;  %v1785_v15 = vld [vmem:[#allocation4 + $0x170] sm:$0xf0]  ;;  %v114_v16 = vsel %vm109_vm0, %v1242_v7, 0  ;;  %v1425_v19 = vld [vmem:[#allocation4 + $0x150] sm:$0xf] }
  0x14   :  { %129 = vmatpush.bf16.msra.mxu3 %v111_v12  ;;  %v117_v17 = vsel %vm109_vm0, %v1246_v8, 0  ;;  %v1438_v18 = vor.u32 %v1785_v15, %v1437_v14  ;;  %v1782_v20 = vld [vmem:[#allocation4 + $0x158] sm:$0xf0]  ;;  %142 = vmatpush.bf16.msra.mxu1 %v114_v16  ;;  %v1341_v22 = vld [vmem:[#allocation4 + $0xa8] sm:$0xf] }
  0x15   :  { %155 = vmatpush.bf16.msra.mxu2 %v117_v17  ;;  %v120_v21 = vsel %vm109_vm0, %v1250_v13, 0  ;;  %v1761_v23 = vld [vmem:[#allocation4 + $0xb0] sm:$0xf0]  ;;  %v1426_v24 = vor.u32 %v1782_v20, %v1425_v19  ;;  %v1533_v26 = vld [vmem:[#allocation4 + $0x228] sm:$0xf] }
  0x16   :  { %v1342_v25 = vor.u32 %v1761_v23, %v1341_v22  ;;  %v1809_v27 = vld [vmem:[#allocation4 + $0x230] sm:$0xf0]  ;;  %v1413_v28 = vld [vmem:[#allocation4 + $0x138] sm:$0xf]  ;;  %v1779_v30 = vld [vmem:[#allocation4 + $0x140] sm:$0xf0] }
  0x17   :  { %1251 = vmatmul.msk.bf16.vlgmr.msra.gmra.mxu3 %vm105_vm1, %v2006_v9  ;;  %v1534_v29 = vor.u32 %v1809_v27, %v1533_v26  ;;  %v1329_v31 = vld [vmem:[#allocation4 + $0x90] sm:$0xf]  ;;  %v1758_v32 = vld [vmem:[#allocation4 + $0x98] sm:$0xf0]  ;;  %1252 = vmatmul.msk.bf16.vlgmr.msra.gmra.mxu1 %vm105_vm1, %v2006_v9  ;;  %v1317_v37 = vld [vmem:[#allocation4 + $0x78] sm:$0xf]  ;;  %v1414_v38 = vor.u32 %v1779_v30, %v1413_v28 }
  0x18   :  { %168 = vmatpush.bf16.msrb.mxu3 %v120_v21  ;;  %843 = vmatpush.bf16.msrb.mxu1 %v1438_v18  ;;  %v1521_v33 = vld [vmem:[#allocation4 + $0x210] sm:$0xf]  ;;  %v1806_v34 = vld [vmem:[#allocation4 + $0x218] sm:$0xf0]  ;;  %v1330_v35 = vor.u32 %v1758_v32, %v1329_v31  ;;  %v1755_v39 = vld [vmem:[#allocation4 + $0x80] sm:$0xf0] }
  0x19   :  { %1253 = vmatmul.msk.bf16.vlgmr.msra.gmra.mxu2 %vm105_vm1, %v2006_v9  ;;  %830 = vmatpush.bf16.msra.mxu0 %v1342_v25  ;;  %v1522_v36 = vor.u32 %v1806_v34, %v1521_v33  ;;  %v1509_v40 = vld [vmem:[#allocation4 + $0x1f8] sm:$0xf]  ;;  %v1803_v41 = vld [vmem:[#allocation4 + $0x200] sm:$0xf0]  ;;  %v1401_v42 = vld [vmem:[#allocation4 + $0x120] sm:$0xf]  ;;  %v1318_v44 = vor.u32 %v1755_v39, %v1317_v37 }
  0x1a   :  { %856 = vmatpush.bf16.msrb.mxu2 %v1534_v29  ;;  %v1776_v43 = vld [vmem:[#allocation4 + $0x128] sm:$0xf0]  ;;  %v1510_v45 = vor.u32 %v1803_v41, %v1509_v40  ;;  %v1305_v46 = vld [vmem:[#allocation4 + $0x60] sm:$0xf]  ;;  %v1629_v51 = vld [vmem:[#allocation4 + $0x2e8] sm:$0xf] }
  0x1b   :  { %v1752_v47 = vld [vmem:[#allocation4 + $0x68] sm:$0xf0]  ;;  %v1402_v48 = vor.u32 %v1776_v43, %v1401_v42  ;;  %v1497_v49 = vld [vmem:[#allocation4 + $0x1e0] sm:$0xf]  ;;  %v1389_v52 = vld [vmem:[#allocation4 + $0x108] sm:$0xf] }
  0x1c   :  { %844 = vmatpush.bf16.msrb.mxu1 %v1426_v24  ;;  %v1800_v50 = vld [vmem:[#allocation4 + $0x1e8] sm:$0xf0]  ;;  %v1773_v53 = vld [vmem:[#allocation4 + $0x110] sm:$0xf0]  ;;  %v1306_v56 = vor.u32 %v1752_v47, %v1305_v46  ;;  %v1293_v58 = vld [vmem:[#allocation4 + $0x48] sm:$0xf] }
  0x1d   :  { %831 = vmatpush.bf16.msra.mxu0 %v1330_v35  ;;  %v1833_v54 = vld [vmem:[#allocation4 + $0x2f0] sm:$0xf0]  ;;  %v1498_v57 = vor.u32 %v1800_v50, %v1497_v49  ;;  %v1617_v59 = vld [vmem:[#allocation4 + $0x2d0] sm:$0xf]  ;;  %v1830_v60 = vld [vmem:[#allocation4 + $0x2d8] sm:$0xf0]  ;;  %v1390_v61 = vor.u32 %v1773_v53, %v1389_v52 }
  0x1e   :  { %857 = vmatpush.bf16.msrb.mxu2 %v1522_v36  ;;  %v1630_v55 = vor.u32 %v1833_v54, %v1629_v51  ;;  %v1749_v62 = vld [vmem:[#allocation4 + $0x50] sm:$0xf0]  ;;  %v1485_v63 = vld [vmem:[#allocation4 + $0x1c8] sm:$0xf]  ;;  %v1618_v1 = vor.u32 %v1830_v60, %v1617_v59  ;;  %v1377_v2 = vld [vmem:[#allocation4 + $0xf0] sm:$0xf] }
  0x1f   :  { %v1797_v0 = vld [vmem:[#allocation4 + $0x1d0] sm:$0xf0]  ;;  %v1770_v3 = vld [vmem:[#allocation4 + $0xf8] sm:$0xf0]  ;;  %v1605_v4 = vld [vmem:[#allocation4 + $0x2b8] sm:$0xf]  ;;  %v1294_v5 = vor.u32 %v1749_v62, %v1293_v58 }
  0x20   :  { %845 = vmatpush.bf16.msrb.mxu1 %v1414_v38  ;;  %869 = vmatpush.bf16.msra.mxu3 %v1630_v55  ;;  %v1486_v6 = vor.u32 %v1797_v0, %v1485_v63  ;;  %v1365_v7 = vld [vmem:[#allocation4 + $0xd8] sm:$0xf]  ;;  %v1281_v8 = vld [vmem:[#allocation4 + $0x30] sm:$0xf]  ;;  %v1827_v10 = vld [vmem:[#allocation4 + $0x2c0] sm:$0xf0]  ;;  %v1378_v11 = vor.u32 %v1770_v3, %v1377_v2 }
  0x21   :  { %832 = vmatpush.bf16.msra.mxu0 %v1318_v44  ;;  %v1746_v12 = vld [vmem:[#allocation4 + $0x38] sm:$0xf0]  ;;  %v1473_v13 = vld [vmem:[#allocation4 + $0x1b0] sm:$0xf]  ;;  %v1606_v15 = vor.u32 %v1827_v10, %v1605_v4  ;;  %v1767_v16 = vld [vmem:[#allocation4 + $0xe0] sm:$0xf0] }
  0x22   :  { %858 = vmatpush.bf16.msrb.mxu2 %v1510_v45  ;;  %v1794_v14 = vld [vmem:[#allocation4 + $0x1b8] sm:$0xf0]  ;;  %v1593_v17 = vld [vmem:[#allocation4 + $0x2a0] sm:$0xf]  ;;  %v1824_v18 = vld [vmem:[#allocation4 + $0x2a8] sm:$0xf0]  ;;  %v1282_v19 = vor.u32 %v1746_v12, %v1281_v8  ;;  %v1366_v23 = vor.u32 %v1767_v16, %v1365_v7 }
  0x23   :  { %v1474_v20 = vor.u32 %v1794_v14, %v1473_v13  ;;  %v1353_v21 = vld [vmem:[#allocation4 + $0xc0] sm:$0xf]  ;;  %v1269_v22 = vld [vmem:[#allocation4 + $0x18] sm:$0xf]  ;;  %v1743_v24 = vld [vmem:[#allocation4 + $0x20] sm:$0xf0]  ;;  %v1594_v27 = vor.u32 %v1824_v18, %v1593_v17 }
  0x24   :  { %846 = vmatpush.bf16.msrb.mxu1 %v1402_v48  ;;  %870 = vmatpush.bf16.msra.mxu3 %v1618_v1  ;;  %v1461_v25 = vld [vmem:[#allocation4 + $0x198] sm:$0xf]  ;;  %v1791_v26 = vld [vmem:[#allocation4 + $0x1a0] sm:$0xf0]  ;;  %v1764_v28 = vld [vmem:[#allocation4 + $0xc8] sm:$0xf0]  ;;  %v1270_v32 = vor.u32 %v1743_v24, %v1269_v22 }
  0x25   :  { %833 = vmatpush.bf16.msra.mxu0 %v1306_v56  ;;  %v1581_v29 = vld [vmem:[#allocation4 + $0x288] sm:$0xf]  ;;  %v1821_v30 = vld [vmem:[#allocation4 + $0x290] sm:$0xf0]  ;;  %v1439_v31 = vld [vmem:[#allocation4 + $0x174] sm:$0xf0]  ;;  %v1462_v33 = vor.u32 %v1791_v26, %v1461_v25  ;;  %v1354_v36 = vor.u32 %v1764_v28, %v1353_v21 }
  0x26   :  { %859 = vmatpush.bf16.msrb.mxu2 %v1498_v57  ;;  %v1257_v34 = vld [vmem:[#allocation4] sm:$0xf]  ;;  %v1740_v35 = vld [vmem:[#allocation4 + $0x8] sm:$0xf0]  ;;  %v1781_v37 = vld [vmem:[#allocation4 + $0x154] sm:$0xf]  ;;  %v1582_v41 = vor.u32 %v1821_v30, %v1581_v29 }
  0x27   :  { %1254 = vmatmul.msk.bf16.vlgmr.msrb.gmra.mxu3 %vm105_vm1, %v2006_v9  ;;  %v1784_v9 = vld [vmem:[#allocation4 + $0x16c] sm:$0xf]  ;;  %v1449_v38 = vld [vmem:[#allocation4 + $0x180] sm:$0xf]  ;;  %v1343_v43 = vld [vmem:[#allocation4 + $0xb4] sm:$0xf0]  ;;  %v1258_v49 = vor.u32 %v1740_v35, %v1257_v34 }
  0x28   :  { %847 = vmatpush.bf16.msrb.mxu1 %v1390_v61  ;;  %871 = vmatpush.bf16.msra.mxu3 %v1606_v15  ;;  %v1788_v39 = vld [vmem:[#allocation4 + $0x188] sm:$0xf0]  ;;  %v1442_v42 = vor.u32 %v1784_v9, %v1439_v31  ;;  %v1535_v45 = vld [vmem:[#allocation4 + $0x234] sm:$0xf0]  ;;  %v1427_v46 = vld [vmem:[#allocation4 + $0x15c] sm:$0xf0] }
  0x29   :  { %834 = vmatpush.bf16.msra.mxu0 %v1294_v5  ;;  %v1760_v40 = vld [vmem:[#allocation4 + $0xac] sm:$0xf]  ;;  %v1569_v47 = vld [vmem:[#allocation4 + $0x270] sm:$0xf]  ;;  %v1818_v48 = vld [vmem:[#allocation4 + $0x278] sm:$0xf0]  ;;  %v1450_v50 = vor.u32 %v1788_v39, %v1449_v38  ;;  %v1430_v55 = vor.u32 %v1781_v37, %v1427_v46 }
  0x2a   :  { %860 = vmatpush.bf16.msrb.mxu2 %v1486_v6  ;;  %v1808_v44 = vld [vmem:[#allocation4 + $0x22c] sm:$0xf]  ;;  %v1346_v51 = vor.u32 %v1760_v40, %v1343_v43  ;;  %v1778_v53 = vld [vmem:[#allocation4 + $0x13c] sm:$0xf]  ;;  %v1757_v54 = vld [vmem:[#allocation4 + $0x94] sm:$0xf]  ;;  %v1570_v59 = vor.u32 %v1818_v48, %v1569_v47 }
  0x2b   :  { %v1538_v52 = vor.u32 %v1808_v44, %v1535_v45  ;;  %v1331_v56 = vld [vmem:[#allocation4 + $0x9c] sm:$0xf0]  ;;  %v1805_v57 = vld [vmem:[#allocation4 + $0x214] sm:$0xf]  ;;  %v1415_v60 = vld [vmem:[#allocation4 + $0x144] sm:$0xf0] }
  0x2c   :  { %848 = vmatpush.bf16.msrb.mxu1 %v1378_v11  ;;  %872 = vmatpush.bf16.msra.mxu3 %v1594_v27  ;;  %v1523_v58 = vld [vmem:[#allocation4 + $0x21c] sm:$0xf0]  ;;  %v1557_v61 = vld [vmem:[#allocation4 + $0x258] sm:$0xf]  ;;  %v1815_v62 = vld [vmem:[#allocation4 + $0x260] sm:$0xf0]  ;;  %v1334_v63 = vor.u32 %v1757_v54, %v1331_v56  ;;  %v1418_v2 = vor.u32 %v1778_v53, %v1415_v60 }
  0x2d   :  { %835 = vmatpush.bf16.msra.mxu0 %v1282_v19  ;;  %v1526_v0 = vor.u32 %v1805_v57, %v1523_v58  ;;  %v1754_v1 = vld [vmem:[#allocation4 + $0x7c] sm:$0xf]  ;;  %v1319_v3 = vld [vmem:[#allocation4 + $0x84] sm:$0xf0]  ;;  %v1558_v6 = vor.u32 %v1815_v62, %v1557_v61  ;;  %v1775_v7 = vld [vmem:[#allocation4 + $0x124] sm:$0xf] }
  0x2e   :  { %861 = vmatpush.bf16.msrb.mxu2 %v1474_v20  ;;  %v1802_v4 = vld [vmem:[#allocation4 + $0x1fc] sm:$0xf]  ;;  %v1511_v5 = vld [vmem:[#allocation4 + $0x204] sm:$0xf0]  ;;  %v1403_v8 = vld [vmem:[#allocation4 + $0x12c] sm:$0xf0]  ;;  %v1322_v10 = vor.u32 %v1754_v1, %v1319_v3 }
  0x2f   :  { %v1514_v11 = vor.u32 %v1802_v4, %v1511_v5  ;;  %v1751_v12 = vld [vmem:[#allocation4 + $0x64] sm:$0xf]  ;;  %v1406_v13 = vor.u32 %v1775_v7, %v1403_v8  ;;  %v1307_v14 = vld [vmem:[#allocation4 + $0x6c] sm:$0xf0]  ;;  %v1772_v17 = vld [vmem:[#allocation4 + $0x10c] sm:$0xf] }
  0x30   :  { %849 = vmatpush.bf16.msrb.mxu1 %v1366_v23  ;;  %873 = vmatpush.bf16.msra.mxu3 %v1582_v41  ;;  %v1799_v15 = vld [vmem:[#allocation4 + $0x1e4] sm:$0xf]  ;;  %v1499_v16 = vld [vmem:[#allocation4 + $0x1ec] sm:$0xf0]  ;;  %v1391_v18 = vld [vmem:[#allocation4 + $0x114] sm:$0xf0]  ;;  %v1310_v19 = vor.u32 %v1751_v12, %v1307_v14 }
  0x31   :  { %836 = vmatpush.bf16.msra.mxu0 %v1270_v32  ;;  %v1502_v20 = vor.u32 %v1799_v15, %v1499_v16  ;;  %v1394_v21 = vor.u32 %v1772_v17, %v1391_v18  ;;  %v1769_v22 = vld [vmem:[#allocation4 + $0xf4] sm:$0xf]  ;;  %v1379_v23 = vld [vmem:[#allocation4 + $0xfc] sm:$0xf0]  ;;  %v1812_v26 = vld [vmem:[#allocation4 + $0x248] sm:$0xf0] }
  0x32   :  { %862 = vmatpush.bf16.msrb.mxu2 %v1462_v33  ;;  %v1382_v24 = vor.u32 %v1769_v22, %v1379_v23  ;;  %v1545_v25 = vld [vmem:[#allocation4 + $0x240] sm:$0xf]  ;;  %v1748_v28 = vld [vmem:[#allocation4 + $0x4c] sm:$0xf]  ;;  %v1295_v29 = vld [vmem:[#allocation4 + $0x54] sm:$0xf0] }
  0x33   :  { %v1546_v27 = vor.u32 %v1812_v26, %v1545_v25  ;;  %v1796_v30 = vld [vmem:[#allocation4 + $0x1cc] sm:$0xf]  ;;  %v1298_v9 = vor.u32 %v1748_v28, %v1295_v29  ;;  %v1487_v31 = vld [vmem:[#allocation4 + $0x1d4] sm:$0xf0]  ;;  %v1367_v37 = vld [vmem:[#allocation4 + $0xe4] sm:$0xf0] }
  0x34   :  { %850 = vmatpush.bf16.msrb.mxu1 %v1354_v36  ;;  %874 = vmatpush.bf16.msra.mxu3 %v1570_v59  ;;  %v1832_v32 = vld [vmem:[#allocation4 + $0x2ec] sm:$0xf]  ;;  %v1631_v33 = vld [vmem:[#allocation4 + $0x2f4] sm:$0xf0]  ;;  %v1490_v34 = vor.u32 %v1796_v30, %v1487_v31  ;;  %v1766_v36 = vld [vmem:[#allocation4 + $0xdc] sm:$0xf] }
  0x35   :  { %837 = vmatpush.bf16.msra.mxu0 %v1258_v49  ;;  %v1634_v35 = vor.u32 %v1832_v32, %v1631_v33  ;;  %v1370_v38 = vor.u32 %v1766_v36, %v1367_v37  ;;  %v1745_v39 = vld [vmem:[#allocation4 + $0x34] sm:$0xf]  ;;  %v1283_v40 = vld [vmem:[#allocation4 + $0x3c] sm:$0xf0]  ;;  %v1763_v48 = vld [vmem:[#allocation4 + $0xc4] sm:$0xf] }
  0x36   :  { %863 = vmatpush.bf16.msrb.mxu2 %v1450_v50  ;;  %v1793_v41 = vld [vmem:[#allocation4 + $0x1b4] sm:$0xf]  ;;  %v1475_v43 = vld [vmem:[#allocation4 + $0x1bc] sm:$0xf0]  ;;  %v1355_v49 = vld [vmem:[#allocation4 + $0xcc] sm:$0xf0] }
  0x37   :  { %v1829_v44 = vld [vmem:[#allocation4 + $0x2d4] sm:$0xf]  ;;  %v1619_v45 = vld [vmem:[#allocation4 + $0x2dc] sm:$0xf0]  ;;  %v1478_v46 = vor.u32 %v1793_v41, %v1475_v43  ;;  %v1358_v50 = vor.u32 %v1763_v48, %v1355_v49  ;;  %v1790_v53 = vld [vmem:[#allocation4 + $0x19c] sm:$0xf] }
  0x38   :  { %895 = vmatpush.bf16.msra.mxu1 %v1442_v42  ;;  %875 = vmatpush.bf16.msra.mxu3 %v1558_v6  ;;  %v1286_v42 = vor.u32 %v1745_v39, %v1283_v40  ;;  %v1622_v47 = vor.u32 %v1829_v44, %v1619_v45  ;;  %v1826_v56 = vld [vmem:[#allocation4 + $0x2bc] sm:$0xf]  ;;  %v1607_v57 = vld [vmem:[#allocation4 + $0x2c4] sm:$0xf0]  ;;  %v1739_v60 = vld [vmem:[#allocation4 + $0x4] sm:$0xf] }
  0x39   :  { %882 = vmatpush.bf16.msrb.mxu0 %v1346_v51  ;;  %v1742_v51 = vld [vmem:[#allocation4 + $0x1c] sm:$0xf]  ;;  %v1610_v59 = vor.u32 %v1826_v56, %v1607_v57  ;;  %v1259_v61 = vld [vmem:[#allocation4 + $0xc] sm:$0xf0]  ;;  %v1787_v62 = vld [vmem:[#allocation4 + $0x184] sm:$0xf] }
  0x3a   :  { %908 = vmatpush.bf16.msra.mxu2 %v1538_v52  ;;  %v1271_v52 = vld [vmem:[#allocation4 + $0x24] sm:$0xf0]  ;;  %v1823_v1 = vld [vmem:[#allocation4 + $0x2a4] sm:$0xf]  ;;  %v1820_v5 = vld [vmem:[#allocation4 + $0x28c] sm:$0xf] }
  0x3b   :  { %v1274_v54 = vor.u32 %v1742_v51, %v1271_v52  ;;  %v1583_v6 = vld [vmem:[#allocation4 + $0x294] sm:$0xf0]  ;;  %v1817_v8 = vld [vmem:[#allocation4 + $0x274] sm:$0xf]  ;;  %v1814_v12 = vld [vmem:[#allocation4 + $0x25c] sm:$0xf] }
  0x3c   :  { %896 = vmatpush.bf16.msra.mxu1 %v1430_v55  ;;  %876 = vmatpush.bf16.msra.mxu3 %v1546_v27  ;;  %v1463_v55 = vld [vmem:[#allocation4 + $0x1a4] sm:$0xf0]  ;;  %v1586_v7 = vor.u32 %v1820_v5, %v1583_v6  ;;  %v2023_v15 = vld [vmem:[%s2060_s2] sm:$0xf]  ;;  %v1811_v16 = vld [vmem:[#allocation4 + $0x244] sm:$0xf] }
  0x3d   :  { %883 = vmatpush.bf16.msrb.mxu0 %v1334_v63  ;;  %v1466_v58 = vor.u32 %v1790_v53, %v1463_v55  ;;  %v1262_v63 = vor.u32 %v1739_v60, %v1259_v61  ;;  %v1547_v17 = vld [vmem:[#allocation4 + $0x24c] sm:$0xf0]  ;;  %v1786_v23 = vld [vmem:[#allocation4 + $0x178] sm:$0xf0]  ;;  %v83_v26 = vperm.slane %v2023_v15, 2 }
  0x3e   :  { %909 = vmatpush.bf16.msra.mxu2 %v1526_v0  ;;  %v1451_v0 = vld [vmem:[#allocation4 + $0x18c] sm:$0xf0]  ;;  %v1550_v18 = vor.u32 %v1811_v16, %v1547_v17  ;;  %v1433_v30 = vld [vmem:[#allocation4 + $0x158] sm:$0xf]  ;;  %v1810_v37 = vld [vmem:[#allocation4 + $0x238] sm:$0xf0] }
  0x3f   :  { %v1454_v3 = vor.u32 %v1787_v62, %v1451_v0  ;;  %v1445_v22 = vld [vmem:[#allocation4 + $0x170] sm:$0xf]  ;;  %v1421_v43 = vld [vmem:[#allocation4 + $0x140] sm:$0xf]  ;;  %v1780_v44 = vld [vmem:[#allocation4 + $0x148] sm:$0xf0] }
  0x40   :  { %897 = vmatpush.bf16.msra.mxu1 %v1418_v2  ;;  %921 = vmatpush.bf16.msrb.mxu3 %v1634_v35  ;;  %v1595_v2 = vld [vmem:[#allocation4 + $0x2ac] sm:$0xf0]  ;;  %v1446_v27 = vor.u32 %v1786_v23, %v1445_v22  ;;  %v1759_v48 = vld [vmem:[#allocation4 + $0xa0] sm:$0xf0]  ;;  %v1422_v52 = vor.u32 %v1780_v44, %v1421_v43  ;;  %v1409_v55 = vld [vmem:[#allocation4 + $0x128] sm:$0xf] }
  0x41   :  { %884 = vmatpush.bf16.msrb.mxu0 %v1322_v10  ;;  %v1598_v4 = vor.u32 %v1823_v1, %v1595_v2  ;;  %v1571_v10 = vld [vmem:[#allocation4 + $0x27c] sm:$0xf0]  ;;  %v1349_v33 = vld [vmem:[#allocation4 + $0xb0] sm:$0xf]  ;;  %v1807_v51 = vld [vmem:[#allocation4 + $0x220] sm:$0xf0] }
  0x42   :  { %910 = vmatpush.bf16.msra.mxu2 %v1514_v11  ;;  %v1574_v11 = vor.u32 %v1817_v8, %v1571_v10  ;;  %v1541_v36 = vld [vmem:[#allocation4 + $0x230] sm:$0xf]  ;;  %v1777_v56 = vld [vmem:[#allocation4 + $0x130] sm:$0xf0]  ;;  %v1756_v60 = vld [vmem:[#allocation4 + $0x88] sm:$0xf0] }
  0x43   :  { %v1517_v61 = vld [vmem:[#allocation4 + $0x200] sm:$0xf]  ;;  %v1804_v62 = vld [vmem:[#allocation4 + $0x208] sm:$0xf0]  ;;  %v1397_v1 = vld [vmem:[#allocation4 + $0x110] sm:$0xf] }
  0x44   :  { %898 = vmatpush.bf16.msra.mxu1 %v1406_v13  ;;  %922 = vmatpush.bf16.msrb.mxu3 %v1622_v47  ;;  %v1559_v13 = vld [vmem:[#allocation4 + $0x264] sm:$0xf0]  ;;  %v1337_v47 = vld [vmem:[#allocation4 + $0x98] sm:$0xf]  ;;  %v1774_v2 = vld [vmem:[#allocation4 + $0x118] sm:$0xf0] }
  0x45   :  { %885 = vmatpush.bf16.msrb.mxu0 %v1310_v19  ;;  %v1562_v14 = vor.u32 %v1814_v12, %v1559_v13  ;;  %v82_v19 = vperm.slane %v2023_v15, 1  ;;  %v1313_v5 = vld [vmem:[#allocation4 + $0x68] sm:$0xf]  ;;  %v1753_v6 = vld [vmem:[#allocation4 + $0x70] sm:$0xf0]  ;;  %v1398_v10 = vor.u32 %v1774_v2, %v1397_v1 }
  0x46   :  { %911 = vmatpush.bf16.msra.mxu2 %v1502_v20  ;;  %v1801_v8 = vld [vmem:[#allocation4 + $0x1f0] sm:$0xf0]  ;;  %v1314_v12 = vor.u32 %v1753_v6, %v1313_v5  ;;  %v1385_v13 = vld [vmem:[#allocation4 + $0xf8] sm:$0xf]  ;;  %v1637_v23 = vld [vmem:[#allocation4 + $0x2f0] sm:$0xf] }
  0x47   :  { %v1277_v43 = vld [vmem:[#allocation4 + $0x20] sm:$0xf]  ;;  %v1589_v1 = vld [vmem:[#allocation4 + $0x290] sm:$0xf]  ;;  %v1822_v2 = vld [vmem:[#allocation4 + $0x298] sm:$0xf0] }
  0x48   :  { %899 = vmatpush.bf16.msra.mxu1 %v1394_v21  ;;  %923 = vmatpush.bf16.msrb.mxu3 %v1610_v59  ;;  %v1325_v59 = vld [vmem:[#allocation4 + $0x80] sm:$0xf]  ;;  %v1819_v5 = vld [vmem:[#allocation4 + $0x280] sm:$0xf0] }
  0x49   :  { %886 = vmatpush.bf16.msrb.mxu0 %v1298_v9  ;;  %v1783_v9 = vld [vmem:[#allocation4 + $0x160] sm:$0xf0]  ;;  %v1326_v0 = vor.u32 %v1756_v60, %v1325_v59  ;;  %v1789_v59 = vld [vmem:[#allocation4 + $0x190] sm:$0xf0]  ;;  %v1601_v60 = vld [vmem:[#allocation4 + $0x2a8] sm:$0xf] }
  0x4a   :  { %912 = vmatpush.bf16.msra.mxu2 %v1490_v34  ;;  %v1762_v34 = vld [vmem:[#allocation4 + $0xb8] sm:$0xf0]  ;;  %v1434_v39 = vor.u32 %v1783_v9, %v1433_v30  ;;  %v1289_v9 = vld [vmem:[#allocation4 + $0x38] sm:$0xf] }
  0x4c   :  { %900 = vmatpush.bf16.msra.mxu1 %v1382_v24  ;;  %924 = vmatpush.bf16.msrb.mxu3 %v1598_v4  ;;  %v81_v24 = vperm.slane %v2023_v15, 0  ;;  %v1518_v4 = vor.u32 %v1804_v62, %v1517_v61  ;;  %v1825_v61 = vld [vmem:[#allocation4 + $0x2b0] sm:$0xf0] }
  0x4d   :  { %887 = vmatpush.bf16.msrb.mxu0 %v1286_v42  ;;  %v1350_v42 = vor.u32 %v1762_v34, %v1349_v33  ;;  %v1481_v33 = vld [vmem:[#allocation4 + $0x1b8] sm:$0xf]  ;;  %v1795_v34 = vld [vmem:[#allocation4 + $0x1c0] sm:$0xf0] }
  0x4e   :  { %913 = vmatpush.bf16.msra.mxu2 %v1478_v46  ;;  %v1542_v46 = vor.u32 %v1810_v37, %v1541_v36  ;;  %v1625_v36 = vld [vmem:[#allocation4 + $0x2d8] sm:$0xf]  ;;  %v1831_v37 = vld [vmem:[#allocation4 + $0x2e0] sm:$0xf0] }
  0x4f   :  { %v1626_v44 = vor.u32 %v1831_v37, %v1625_v36  ;;  %v1855_v36 = vld [vmem:[#allocation6 + $0xa0] sm:$0xff] }
  0x50   :  { %901 = vmatpush.bf16.msra.mxu1 %v1370_v38  ;;  %925 = vmatpush.bf16.msrb.mxu3 %v1586_v7  ;;  %v1505_v7 = vld [vmem:[#allocation4 + $0x1e8] sm:$0xf] }
  0x51   :  { %888 = vmatpush.bf16.msrb.mxu0 %v1274_v54  ;;  %v1338_v54 = vor.u32 %v1759_v48, %v1337_v47  ;;  %v1506_v17 = vor.u32 %v1801_v8, %v1505_v7  ;;  %v1469_v47 = vld [vmem:[#allocation4 + $0x1a0] sm:$0xf]  ;;  %v1792_v48 = vld [vmem:[#allocation4 + $0x1a8] sm:$0xf0] }
  0x52   :  { %914 = vmatpush.bf16.msra.mxu2 %v1466_v58  ;;  %v1565_v7 = vld [vmem:[#allocation4 + $0x260] sm:$0xf]  ;;  %v1816_v8 = vld [vmem:[#allocation4 + $0x268] sm:$0xf0] }
  0x54   :  { %902 = vmatpush.bf16.msra.mxu1 %v1358_v50  ;;  %926 = vmatpush.bf16.msrb.mxu3 %v1574_v11  ;;  %v1529_v50 = vld [vmem:[#allocation4 + $0x218] sm:$0xf] }
  0x55   :  { %889 = vmatpush.bf16.msrb.mxu0 %v1262_v63  ;;  %v1530_v57 = vor.u32 %v1807_v51, %v1529_v50  ;;  %v1410_v63 = vor.u32 %v1777_v56, %v1409_v55  ;;  %v1613_v51 = vld [vmem:[#allocation4 + $0x2c0] sm:$0xf]  ;;  %v1265_v55 = vld [vmem:[#allocation4 + $0x8] sm:$0xf] }
  0x56   :  { %915 = vmatpush.bf16.msra.mxu2 %v1454_v3  ;;  %v84_v3 = vperm.slane %v2023_v15, 3  ;;  %v1493_v15 = vld [vmem:[#allocation4 + $0x1d0] sm:$0xf] }
  0x58   :  { %927 = vmatpush.bf16.msrb.mxu3 %v1562_v14  ;;  %v1771_v14 = vld [vmem:[#allocation4 + $0x100] sm:$0xf0] }
  0x59   :  { %v1386_v22 = vor.u32 %v1771_v14, %v1385_v13  ;;  %v1842_v13 = vld [vmem:[#allocation6 + $0x38] sm:$0xff]  ;;  %v1841_v14 = vld [vmem:[#allocation6 + $0x30] sm:$0xff] }
  0x5c   :  { %928 = vmatpush.bf16.msrb.mxu3 %v1550_v18  ;;  %v1301_v18 = vld [vmem:[#allocation4 + $0x50] sm:$0xf] }
  0x94   :  { %v144_v20 = vpop.f32.mrf.mxu1 }
  0x95   :  { %v145_v21 = vadd.f32 %v144_v20, %v82_v19  ;;  %v1750_v19 = vld [vmem:[#allocation4 + $0x58] sm:$0xf0] }
  0x96   :  { %v1798_v20 = vld [vmem:[#allocation4 + $0x1d8] sm:$0xf0] }
  0x97   :  { %v175_v25 = vmax.f32 %v145_v21, 0.0  ;;  %v1494_v30 = vor.u32 %v1798_v20, %v1493_v15  ;;  %v1836_v15 = vld [vmem:[#allocation6 + $0x8] sm:$0xff] }
  0x98   :  { %v1848_v20 = vld [vmem:[#allocation6 + $0x68] sm:$0xff] }
  0x99   :  { %v2028_v28 = vpack.c.bf16 %v175_v25, %v175_v25  ;;  %v1373_v25 = vld [vmem:[#allocation4 + $0xe0] sm:$0xf] }
  0x9a   :  { %v131_v29 = vpop.f32.mrf.mxu3 }
  0x9b   :  { %v132_v31 = vadd.f32 %v131_v29, %v81_v24  ;;  %851 = vmatmul.bf16.vlgmr.msrb.gmra.mxu1 %v2028_v28  ;;  %v1834_v24 = vld [vmem:[#allocation4 + $0x2f8] sm:$0xf0]  ;;  %v1302_v29 = vor.u32 %v1750_v19, %v1301_v18  ;;  %v1837_v18 = vld [vmem:[#allocation6 + $0x10] sm:$0xff] }
  0x9c   :  { %v157_v32 = vpop.f32.mrf.mxu2  ;;  %947 = vmatpush.bf16.msrb.mxu1 %v1446_v27  ;;  %v146_v40 = vpop.f32.mrf.mxu1  ;;  %v1849_v19 = vld [vmem:[#allocation6 + $0x70] sm:$0xff] }
  0x9d   :  { %v158_v35 = vadd.f32 %v157_v32, %v83_v26  ;;  %v174_v38 = vmax.f32 %v132_v31, 0.0  ;;  %v1768_v26 = vld [vmem:[#allocation4 + $0xe8] sm:$0xf0]  ;;  %v1638_v31 = vor.u32 %v1834_v24, %v1637_v23  ;;  %v1747_v32 = vld [vmem:[#allocation4 + $0x40] sm:$0xf0]  ;;  %v1846_v24 = vld [vmem:[#allocation6 + $0x58] sm:$0xff] }
  0x9e   :  { %v1765_v40 = vld [vmem:[#allocation4 + $0xd0] sm:$0xf0] }
  0x9f   :  { %v176_v41 = vmax.f32 %v158_v35, 0.0  ;;  %v2031_v45 = vpack.c.bf16 %v174_v38, %v174_v38  ;;  %v1374_v35 = vor.u32 %v1768_v26, %v1373_v25  ;;  %v1858_v25 = vld [vmem:[#allocation6 + $0xb8] sm:$0xff] }
  0xa0   :  { %948 = vmatpush.bf16.msrb.mxu1 %v1434_v39  ;;  %v1361_v39 = vld [vmem:[#allocation4 + $0xc8] sm:$0xf] }
  0xa1   :  { %v2033_v49 = vpack.c.bf16 %v176_v41, %v176_v41  ;;  %838 = vmatmul.bf16.vlgmr.msra.gmra.mxu0 %v2031_v45  ;;  %v1290_v41 = vor.u32 %v1747_v32, %v1289_v9  ;;  %v1362_v50 = vor.u32 %v1765_v40, %v1361_v39  ;;  %v1844_v9 = vld [vmem:[#allocation6 + $0x48] sm:$0xff]  ;;  %v1854_v39 = vld [vmem:[#allocation6 + $0x98] sm:$0xff] }
  0xa2   :  { %v133_v53 = vpop.f32.mrf.mxu3  ;;  %934 = vmatpush.bf16.msra.mxu0 %v1350_v42  ;;  %v1482_v42 = vor.u32 %v1795_v34, %v1481_v33  ;;  %v310_v33 = vld [vmem:[%s2062_s4] sm:$0x7] }
  0xa3   :  { %864 = vmatmul.bf16.vlgmr.msrb.gmra.mxu2 %v2033_v49  ;;  %v312_v37 = vperm.slane %v310_v33, 0 }
  0xa4   :  { %960 = vmatpush.bf16.msrb.mxu2 %v1542_v46  ;;  %v159_v58 = vpop.f32.mrf.mxu2  ;;  %949 = vmatpush.bf16.msrb.mxu1 %v1422_v52  ;;  %v1744_v46 = vld [vmem:[#allocation4 + $0x28] sm:$0xf0] }
  0xa5   :  { %v1828_v52 = vld [vmem:[#allocation4 + $0x2c8] sm:$0xf0]  ;;  %v1278_v53 = vor.u32 %v1744_v46, %v1277_v43  ;;  %v1457_v58 = vld [vmem:[#allocation4 + $0x188] sm:$0xf] }
  0xa6   :  { %935 = vmatpush.bf16.msra.mxu0 %v1338_v54  ;;  %v1470_v54 = vor.u32 %v1792_v48, %v1469_v47  ;;  %v1614_v56 = vor.u32 %v1828_v52, %v1613_v51 }
  0xa8   :  { %961 = vmatpush.bf16.msrb.mxu2 %v1530_v57  ;;  %950 = vmatpush.bf16.msrb.mxu1 %v1410_v63  ;;  %v1741_v57 = vld [vmem:[#allocation4 + $0x10] sm:$0xf0]  ;;  %v1458_v63 = vor.u32 %v1789_v59, %v1457_v58 }
  0xa9   :  { %v1266_v62 = vor.u32 %v1741_v57, %v1265_v55  ;;  %v1851_v55 = vld [vmem:[#allocation6 + $0x80] sm:$0xff] }
  0xaa   :  { %v170_v11 = vpop.f32.mrf.mxu3  ;;  %936 = vmatpush.bf16.msra.mxu0 %v1326_v0  ;;  %v1602_v0 = vor.u32 %v1825_v61, %v1601_v60 }
  0xab   :  { %v171_v16 = vadd.f32 %v170_v11, %v84_v3  ;;  %903 = vmatmul.bf16.vlgmr.msra.gmra.mxu1 %v2028_v28  ;;  %v1590_v3 = vor.u32 %v1822_v2, %v1589_v1  ;;  %v1813_v11 = vld [vmem:[#allocation4 + $0x250] sm:$0xf0] }
  0xac   :  { %962 = vmatpush.bf16.msrb.mxu2 %v1518_v4  ;;  %951 = vmatpush.bf16.msrb.mxu1 %v1398_v10  ;;  %v1577_v4 = vld [vmem:[#allocation4 + $0x278] sm:$0xf]  ;;  %v1553_v10 = vld [vmem:[#allocation4 + $0x248] sm:$0xf] }
  0xad   :  { %v177_v21 = vmax.f32 %v171_v16, 0.0  ;;  %v1578_v6 = vor.u32 %v1819_v5, %v1577_v4  ;;  %v1838_v16 = vld [vmem:[#allocation6 + $0x18] sm:$0xff] }
  0xae   :  { %937 = vmatpush.bf16.msra.mxu0 %v1314_v12  ;;  %v1554_v12 = vor.u32 %v1813_v11, %v1553_v10 }
  0xaf   :  { %v2039_v27 = vpack.c.bf16 %v177_v21, %v177_v21  ;;  %v1835_v21 = vld [vmem:[#allocation6] sm:$0xff] }
  0xb0   :  { %963 = vmatpush.bf16.msrb.mxu2 %v1506_v17  ;;  %952 = vmatpush.bf16.msrb.mxu1 %v1386_v22  ;;  %v1850_v17 = vld [vmem:[#allocation6 + $0x78] sm:$0xff]  ;;  %v1847_v22 = vld [vmem:[#allocation6 + $0x60] sm:$0xff] }
  0xb1   :  { %877 = vmatmul.bf16.vlgmr.msra.gmra.mxu3 %v2039_v27  ;;  %890 = vmatmul.bf16.vlgmr.msrb.gmra.mxu0 %v2031_v45 }
  0xb2   :  { %v172_v38 = vpop.f32.mrf.mxu3  ;;  %938 = vmatpush.bf16.msra.mxu0 %v1302_v29  ;;  %973 = vmatpush.bf16.msra.mxu3 %v1638_v31  ;;  %v1857_v29 = vld [vmem:[#allocation6 + $0xb0] sm:$0xff]  ;;  %v1856_v31 = vld [vmem:[#allocation6 + $0xa8] sm:$0xff] }
  0xb3   :  { %916 = vmatmul.bf16.vlgmr.msra.gmra.mxu2 %v2033_v49 }
  0xb4   :  { %964 = vmatpush.bf16.msrb.mxu2 %v1494_v30  ;;  %953 = vmatpush.bf16.msrb.mxu1 %v1374_v35  ;;  %v1843_v35 = vld [vmem:[#allocation6 + $0x40] sm:$0xff] }
  0xb6   :  { %939 = vmatpush.bf16.msra.mxu0 %v1290_v41  ;;  %974 = vmatpush.bf16.msra.mxu3 %v1626_v44 }
  0xb8   :  { %965 = vmatpush.bf16.msrb.mxu2 %v1482_v42  ;;  %954 = vmatpush.bf16.msrb.mxu1 %v1362_v50  ;;  %v1853_v42 = vld [vmem:[#allocation6 + $0x90] sm:$0xff]  ;;  %v1852_v50 = vld [vmem:[#allocation6 + $0x88] sm:$0xff] }
  0xba   :  { %940 = vmatpush.bf16.msra.mxu0 %v1278_v53  ;;  %975 = vmatpush.bf16.msra.mxu3 %v1614_v56  ;;  %v313_v56 = vperm.slane %v310_v33, 1 }
  0xbb   :  { %955 = vmatmul.bf16.vlgmr.msrb.gmra.mxu1 %v2028_v28  ;;  %v1566_v28 = vor.u32 %v1816_v8, %v1565_v7  ;;  %v314_v8 = vperm.slane %v310_v33, 2 }
  0xbc   :  { %966 = vmatpush.bf16.msrb.mxu2 %v1470_v54  ;;  %1201 = vmatpush.bf16.msra.mxu1 %v1850_v17 }
  0xbe   :  { %941 = vmatpush.bf16.msra.mxu0 %v1266_v62  ;;  %976 = vmatpush.bf16.msra.mxu3 %v1602_v0 }
  0xc0   :  { %967 = vmatpush.bf16.msrb.mxu2 %v1458_v63  ;;  %1202 = vmatpush.bf16.msra.mxu1 %v1849_v19 }
  0xc1   :  { %929 = vmatmul.bf16.vlgmr.msrb.gmra.mxu3 %v2039_v27  ;;  %942 = vmatmul.bf16.vlgmr.msra.gmra.mxu0 %v2031_v45  ;;  %v1840_v45 = vld [vmem:[#allocation6 + $0x28] sm:$0xff] }
  0xc2   :  { %977 = vmatpush.bf16.msra.mxu3 %v1590_v3  ;;  %1188 = vmatpush.bf16.msrb.mxu0 %v1842_v13 }
  0xc3   :  { %968 = vmatmul.bf16.vlgmr.msrb.gmra.mxu2 %v2033_v49  ;;  %v1839_v49 = vld [vmem:[#allocation6 + $0x20] sm:$0xff] }
  0xc4   :  { %1203 = vmatpush.bf16.msra.mxu1 %v1848_v20  ;;  %1214 = vmatpush.bf16.msra.mxu2 %v1858_v25 }
  0xc6   :  { %978 = vmatpush.bf16.msra.mxu3 %v1578_v6  ;;  %1189 = vmatpush.bf16.msrb.mxu0 %v1841_v14 }
  0xc8   :  { %1204 = vmatpush.bf16.msra.mxu1 %v1847_v22  ;;  %1215 = vmatpush.bf16.msra.mxu2 %v1857_v29 }
  0xca   :  { %979 = vmatpush.bf16.msra.mxu3 %v1566_v28  ;;  %1190 = vmatpush.bf16.msrb.mxu0 %v1840_v45 }
  0xcc   :  { %1205 = vmatpush.bf16.msra.mxu1 %v1846_v24  ;;  %1216 = vmatpush.bf16.msra.mxu2 %v1856_v31 }
  0xce   :  { %980 = vmatpush.bf16.msra.mxu3 %v1554_v12  ;;  %1191 = vmatpush.bf16.msrb.mxu0 %v1839_v49 }
  0xd0   :  { %1217 = vmatpush.bf16.msra.mxu2 %v1855_v36 }
  0xd1   :  { %981 = vmatmul.bf16.vlgmr.msra.gmra.mxu3 %v2039_v27  ;;  %v1845_v27 = vld [vmem:[#allocation6 + $0x50] sm:$0xff] }
  0xd2   :  { %1192 = vmatpush.bf16.msrb.mxu0 %v1838_v16  ;;  %1206 = vmatpush.bf16.msra.mxu1 %v1845_v27 }
  0xd4   :  { %1218 = vmatpush.bf16.msra.mxu2 %v1854_v39 }
  0xd6   :  { %1193 = vmatpush.bf16.msrb.mxu0 %v1837_v18  ;;  %1207 = vmatpush.bf16.msra.mxu1 %v1844_v9 }
  0xd8   :  { %1219 = vmatpush.bf16.msra.mxu2 %v1853_v42 }
  0xda   :  { %1194 = vmatpush.bf16.msrb.mxu0 %v1836_v15  ;;  %1208 = vmatpush.bf16.msra.mxu1 %v1843_v35 }
  0xdc   :  { %1220 = vmatpush.bf16.msra.mxu2 %v1852_v50 }
  0xde   :  { %1195 = vmatpush.bf16.msrb.mxu0 %v1835_v21  ;;  %v1868_v21 = vld [vmem:[%s2064_s6] ss:$0 sm:$0xff] }
  0xe0   :  { %1221 = vmatpush.bf16.msra.mxu2 %v1851_v55 }
 0x118   :  { %v852_v23 = vpop.f32.mrf.mxu1 }
 0x11e   :  { %v839_v26 = vpop.f32.mrf.mxu0 }
 0x11f   :  { %v840_v40 = vadd.f32 %v839_v26, %v312_v37 }
 0x120   :  { %v854_v30 = vpop.f32.mrf.mxu1 }
 0x121   :  { %v853_v44 = vadd.f32 %v852_v23, %v840_v40 }
 0x126   :  { %v865_v32 = vpop.f32.mrf.mxu2  ;;  %v841_v34 = vpop.f32.mrf.mxu0 }
 0x127   :  { %v866_v47 = vadd.f32 %v865_v32, %v853_v44 }
 0x128   :  { %v904_v38 = vpop.f32.mrf.mxu1 }
 0x12e   :  { %v867_v41 = vpop.f32.mrf.mxu2  ;;  %v891_v43 = vpop.f32.mrf.mxu0 }
 0x12f   :  { %v892_v60 = vadd.f32 %v891_v43, %v313_v56 }
 0x130   :  { %v906_v46 = vpop.f32.mrf.mxu1 }
 0x131   :  { %v905_v63 = vadd.f32 %v904_v38, %v892_v60 }
 0x134   :  { %v878_v48 = vpop.f32.mrf.mxu3 }
 0x135   :  { %v879_v51 = vadd.f32 %v878_v48, %v866_v47 }
 0x136   :  { %v917_v52 = vpop.f32.mrf.mxu2  ;;  %v893_v54 = vpop.f32.mrf.mxu0 }
 0x137   :  { %v986_v53 = vmax.f32 %v879_v51, 0.0  ;;  %v918_v1 = vadd.f32 %v917_v52, %v905_v63 }
 0x138   :  { %v956_v58 = vpop.f32.mrf.mxu1 }
 0x139   :  { %v989_v57 = vpack.c.bf16 %v986_v53, %v986_v53 }
 0x13b   :  { %1196 = vmatmul.bf16.vlgmr.msrb.gmra.mxu0 %v989_v57 }
 0x13c   :  { %v880_v59 = vpop.f32.mrf.mxu3 }
 0x13e   :  { %v919_v61 = vpop.f32.mrf.mxu2  ;;  %v943_v62 = vpop.f32.mrf.mxu0 }
 0x13f   :  { %v944_v11 = vadd.f32 %v943_v62, %v314_v8 }
 0x140   :  { %v958_v0 = vpop.f32.mrf.mxu1 }
 0x141   :  { %v957_v12 = vadd.f32 %v956_v58, %v944_v11 }
 0x144   :  { %v930_v2 = vpop.f32.mrf.mxu3 }
 0x145   :  { %v931_v3 = vadd.f32 %v930_v2, %v918_v1 }
 0x146   :  { %v969_v4 = vpop.f32.mrf.mxu2  ;;  %v945_v6 = vpop.f32.mrf.mxu0 }
 0x147   :  { %v987_v5 = vmax.f32 %v931_v3, 0.0  ;;  %v970_v13 = vadd.f32 %v969_v4, %v957_v12 }
 0x149   :  { %v990_v7 = vpack.c.bf16 %v987_v5, %v987_v5 }
 0x14b   :  { %1209 = vmatmul.bf16.vlgmr.msra.gmra.mxu1 %v990_v7 }
 0x14c   :  { %v932_v28 = vpop.f32.mrf.mxu3 }
 0x14e   :  { %v971_v10 = vpop.f32.mrf.mxu2 }
 0x154   :  { %v982_v14 = vpop.f32.mrf.mxu3 }
 0x155   :  { %v983_v45 = vadd.f32 %v982_v14, %v970_v13 }
 0x157   :  { %v988_v49 = vmax.f32 %v983_v45, 0.0 }
 0x159   :  { %v991_v16 = vpack.c.bf16 %v988_v49, %v988_v49 }
 0x15b   :  { %1222 = vmatmul.bf16.vlgmr.msra.gmra.mxu2 %v991_v16 }
 0x15c   :  { %v984_v17 = vpop.f32.mrf.mxu3 }
 0x1b8   :  { %v1197_v18 = vpop.f32.mrf.mxu0 }
 0x1b9   :  { %v1198_v22 = vadd.f32 %v1868_v21, %v1197_v18 }
 0x1c0   :  { %v1199_v19 = vpop.f32.mrf.mxu0 }
 0x1c8   :  { %v1210_v15 = vpop.f32.mrf.mxu1 }
 0x1c9   :  { %v1211_v23 = vadd.f32 %v1210_v15, %v1198_v22 }
 0x1d0   :  { %v1212_v20 = vpop.f32.mrf.mxu1 }
 0x1de   :  { %v1223_v24 = vpop.f32.mrf.mxu2 }
 0x1df   :  { %v1224_v25 = vadd.f32 %v1223_v24, %v1211_v23 }
 0x1e1   :  { %v1227_v26 = vpack.c.bf16 %v1224_v25, %v1224_v25 }
 0x1e3   :  { %1228 = vst [vmem:[%s2065_s7] sm:$0x1] %v1227_v26 }
 0x1e6   :  { %v1225_v27 = vpop.f32.mrf.mxu2 }
 0x1e7   :  { %1233 = vsyncpa [#allocation3], 1 }
 0x1e8   :  { %1234 = vsyncpa [#allocation5], 1 }

</bundles_post_ra>
